<compile_context>
chip_gen: v5e
topology: v5e:2x2
jax: 0.10.0
libtpu: 0.0.40
codegen_flags: <defaults>
</compile_context>

<pallas_src>
import jax
import jax.numpy as jnp
from jax.experimental import pallas as pl
from jax.experimental.pallas import tpu as pltpu

# PW92 correlation parameters: (A, alpha1, beta1, beta2, beta3, beta4)
_PW_PARA = (0.0310907, 0.21370, 7.5957, 3.5876, 1.6382, 0.49294)
_PW_FERRO = (0.01554535, 0.20548, 14.1189, 6.1977, 3.3662, 0.62517)

_EXPONENT = 4.0 / 3.0
_SPIN_SCALE = 1.0 / (2.0 ** _EXPONENT - 2.0)

_LANES = 128
_ROW_ALIGN = 16        # multiple of both the f32 (8) and bf16 (16) sublane tiling
_MAX_BLOCK_ROWS = 4096  # 4096x128xf32 = 2 MiB/block; x3 arrays x2 buffers = 12 MiB VMEM

# Bit-trick seed for t**(-1/3):  I_seed ~= (4/3)*(127 - sigma)*2^23 - I_t/3
_RCBRT_MAGIC = 1419967035.0


def _round_up(v, m):
    return -(-v // m) * m


def _pow_4_3(t):
    """t ** (4/3) for t >= 0 using VPU ops only (no transcendentals).

    r ~= t**(-1/3) from a float bit-trick seed, refined with 4 division-free
    Newton steps r <- r * (4 - t*r^3) / 3; then t^(4/3) = (t*r)^2.
    """
    t = jnp.maximum(t, 1e-12)  # clamp: t == 0 (zeta = +/-1) or tiny negative rounding
    bits = pltpu.bitcast(t, jnp.int32).astype(jnp.float32)
    seed_bits = _RCBRT_MAGIC - bits * (1.0 / 3.0)
    r = pltpu.bitcast(seed_bits.astype(jnp.int32), jnp.float32)
    for _ in range(4):
        r = r * (4.0 - t * r * r * r) * (1.0 / 3.0)
    tr = t * r          # = t^(2/3)
    return tr * tr      # = t^(4/3)


def _get_spin_interp(zeta):
    """Spin interpolation function f(zeta) (VPU-only pow)."""
    return (_pow_4_3(1.0 + zeta) + _pow_4_3(1.0 - zeta) - 2.0) * _SPIN_SCALE


def _pw_correlation(rs, x, x3, x4, params):
    """PW92 correlation energy per particle; x=sqrt(rs), x3=rs^1.5, x4=rs^2 shared."""
    A, alpha1, beta1, beta2, beta3, beta4 = params
    den = (2.0 * A) * (beta1 * x + beta2 * rs + beta3 * x3 + beta4 * x4)
    # log(1 + 1/den) == log((den + 1) * (1/den)); approx EUP reciprocal refined on
    # the VPU with two Newton steps keeps full f32 accuracy.
    inv = pl.reciprocal(den, approx=True)
    inv = inv * (2.0 - den * inv)
    inv = inv * (2.0 - den * inv)
    return (-2.0 * A) * (1.0 + alpha1 * rs) * jnp.log((den + 1.0) * inv)


def _spin_interp2_kernel(rs_ref, zeta_ref, out_ref):
    rs = rs_ref[...].astype(jnp.float32)
    zeta = zeta_ref[...].astype(jnp.float32)
    # Hoist sqrt(rs) and its powers: shared between para and ferro channels.
    x = jnp.sqrt(rs)   # rs^(1/2)
    x3 = rs * x        # rs^(3/2)
    x4 = rs * rs       # rs^2
    ec_para = _pw_correlation(rs, x, x3, x4, _PW_PARA)
    ec_ferro = _pw_correlation(rs, x, x3, x4, _PW_FERRO)
    f = _get_spin_interp(zeta)
    out_ref[...] = (ec_para + f * (ec_ferro - ec_para)).astype(out_ref.dtype)


def spin_interpolate2(rs, zeta, *, block_rows=1024):
    """Elementwise spin-interpolated PW92 correlation via a Pallas TPU kernel."""
    assert rs.shape == zeta.shape, "rs and zeta must have the same shape"
    orig_shape = rs.shape

    if not jnp.issubdtype(rs.dtype, jnp.floating):
        rs = rs.astype(jnp.float32)
    if not jnp.issubdtype(zeta.dtype, jnp.floating):
        zeta = zeta.astype(jnp.float32)
    out_dtype = rs.dtype

    n = rs.size
    rows = _round_up(pl.cdiv(n, _LANES), _ROW_ALIGN)

    # Block selection: large blocks amortize the ~0.35us/step grid overhead; keep
    # >= 8 grid steps for large inputs so the 'parallel' axis shards across
    # TensorCores (v7x megacore); cap so double-buffered VMEM stays small.
    br = min(max(_round_up(block_rows, _ROW_ALIGN), _ROW_ALIGN), _MAX_BLOCK_ROWS, rows)
    if rows // br < 8 and rows >= 8 * 256:
        br = max(256, _round_up(pl.cdiv(rows, 8), _ROW_ALIGN))
    rows_padded = _round_up(rows, br)
    n_padded = rows_padded * _LANES

    rs_flat = jnp.ravel(rs)
    zeta_flat = jnp.ravel(zeta)
    if n_padded != n:
        pad = n_padded - n
        rs_flat = jnp.pad(rs_flat, (0, pad), constant_values=1.0)   # valid rs > 0
        zeta_flat = jnp.pad(zeta_flat, (0, pad), constant_values=0.0)
    rs2 = rs_flat.reshape(rows_padded, _LANES)
    zeta2 = zeta_flat.reshape(rows_padded, _LANES)

    spec = pl.BlockSpec((br, _LANES), lambda i: (i, 0))
    out2 = pl.pallas_call(
        _spin_interp2_kernel,
        out_shape=jax.ShapeDtypeStruct((rows_padded, _LANES), out_dtype),
        grid_spec=pl.GridSpec(
            grid=(rows_padded // br,),
            in_specs=[spec, spec],
            out_specs=spec,
        ),
        compiler_params=pltpu.CompilerParams(
            dimension_semantics=("parallel",),
        ),
    )(rs2, zeta2)
    return out2.reshape(-1)[:n].reshape(orig_shape)


def _reference(rs, zeta):
    """Exact JAX reference (full-precision divide / pow)."""
    rs = rs.astype(jnp.float32)
    zeta = zeta.astype(jnp.float32)

    def pw(rs_, params):
        A, a1, b1, b2, b3, b4 = params
        x = jnp.sqrt(rs_)
        den = 2.0 * A * (b1 * x + b2 * rs_ + b3 * rs_ * x + b4 * rs_ * rs_)
        return (-2.0 * A) * (1.0 + a1 * rs_) * jnp.log(1.0 + 1.0 / den)

    f = ((1.0 + zeta) ** _EXPONENT + (1.0 - zeta) ** _EXPONENT - 2.0) * _SPIN_SCALE
    ec_para = pw(rs, _PW_PARA)
    ec_ferro = pw(rs, _PW_FERRO)
    return ec_para + f * (ec_ferro - ec_para)


if __name__ == "__main__":
    key = jax.random.PRNGKey(0)
    k_rs, k_zeta = jax.random.split(key)
    shape = (2, 4, 16, 16)  # B, C, H, W
    # rs > 0 (Wigner-Seitz radius), zeta in [-1, 1] (fractional polarization)
    rs = jax.random.uniform(k_rs, shape, minval=0.5, maxval=5.0, dtype=jnp.float32)
    zeta = jax.random.uniform(k_zeta, shape, minval=-1.0, maxval=1.0, dtype=jnp.float32)

    out = jax.block_until_ready(spin_interpolate2(rs, zeta))

    ref = _reference(rs, zeta)
    assert out.shape == shape and out.dtype == jnp.float32
    assert jnp.allclose(out, ref, rtol=1e-5, atol=1e-6), "mismatch vs JAX reference"

    print("KERNEL_OK")
</pallas_src>

<mosaic_0001>
module attributes {stable_mosaic.version = 11 : i64} {
  func.func @_spin_interp2_kernel(%arg0: i32, %arg1: memref<16x128xf32, #tpu.memory_space<vmem>>, %arg2: memref<16x128xf32, #tpu.memory_space<vmem>>, %arg3: memref<16x128xf32, #tpu.memory_space<vmem>>) attributes {dimension_semantics = [#tpu.dimension_semantics<parallel>], iteration_bounds = array<i64: 1>, scalar_prefetch = 0 : i64, scratch_operands = 0 : i64, tpu.core_type = #tpu.core_type<tc>, window_params = [{transform_indices = @transform_0, window_bounds = array<i64: 16, 128>}, {transform_indices = @transform_1, window_bounds = array<i64: 16, 128>}, {transform_indices = @transform_2, window_bounds = array<i64: 16, 128>}]} {
    %c0 = arith.constant 0 : index
    %c0_0 = arith.constant 0 : index
    %0 = vector.load %arg1[%c0, %c0_0] : memref<16x128xf32, #tpu.memory_space<vmem>>, vector<16x128xf32>
    %c0_1 = arith.constant 0 : index
    %c0_2 = arith.constant 0 : index
    %1 = vector.load %arg2[%c0_1, %c0_2] : memref<16x128xf32, #tpu.memory_space<vmem>>, vector<16x128xf32>
    %2 = math.sqrt %0 : vector<16x128xf32>
    %3 = arith.mulf %0, %2 : vector<16x128xf32>
    %4 = arith.mulf %0, %0 : vector<16x128xf32>
    %cst = arith.constant 7.595700e+00 : f32
    %5 = vector.broadcast %cst : f32 to vector<16x128xf32>
    %6 = arith.mulf %5, %2 : vector<16x128xf32>
    %cst_3 = arith.constant 3.587600e+00 : f32
    %7 = vector.broadcast %cst_3 : f32 to vector<16x128xf32>
    %8 = arith.mulf %7, %0 : vector<16x128xf32>
    %9 = arith.addf %6, %8 : vector<16x128xf32>
    %cst_4 = arith.constant 1.638200e+00 : f32
    %10 = vector.broadcast %cst_4 : f32 to vector<16x128xf32>
    %11 = arith.mulf %10, %3 : vector<16x128xf32>
    %12 = arith.addf %9, %11 : vector<16x128xf32>
    %cst_5 = arith.constant 4.929400e-01 : f32
    %13 = vector.broadcast %cst_5 : f32 to vector<16x128xf32>
    %14 = arith.mulf %13, %4 : vector<16x128xf32>
    %15 = arith.addf %12, %14 : vector<16x128xf32>
    %cst_6 = arith.constant 6.218140e-02 : f32
    %16 = vector.broadcast %cst_6 : f32 to vector<16x128xf32>
    %17 = arith.mulf %16, %15 : vector<16x128xf32>
    %18 = tpu.reciprocal %17 {approx = true} : vector<16x128xf32> -> vector<16x128xf32>
    %19 = arith.mulf %17, %18 : vector<16x128xf32>
    %cst_7 = arith.constant 2.000000e+00 : f32
    %20 = vector.broadcast %cst_7 : f32 to vector<16x128xf32>
    %21 = arith.subf %20, %19 : vector<16x128xf32>
    %22 = arith.mulf %18, %21 : vector<16x128xf32>
    %23 = arith.mulf %17, %22 : vector<16x128xf32>
    %cst_8 = arith.constant 2.000000e+00 : f32
    %24 = vector.broadcast %cst_8 : f32 to vector<16x128xf32>
    %25 = arith.subf %24, %23 : vector<16x128xf32>
    %26 = arith.mulf %22, %25 : vector<16x128xf32>
    %cst_9 = arith.constant 2.137000e-01 : f32
    %27 = vector.broadcast %cst_9 : f32 to vector<16x128xf32>
    %28 = arith.mulf %27, %0 : vector<16x128xf32>
    %cst_10 = arith.constant 1.000000e+00 : f32
    %29 = vector.broadcast %cst_10 : f32 to vector<16x128xf32>
    %30 = arith.addf %29, %28 : vector<16x128xf32>
    %cst_11 = arith.constant -6.218140e-02 : f32
    %31 = vector.broadcast %cst_11 : f32 to vector<16x128xf32>
    %32 = arith.mulf %31, %30 : vector<16x128xf32>
    %cst_12 = arith.constant 1.000000e+00 : f32
    %33 = vector.broadcast %cst_12 : f32 to vector<16x128xf32>
    %34 = arith.addf %17, %33 : vector<16x128xf32>
    %35 = arith.mulf %34, %26 : vector<16x128xf32>
    %36 = math.log %35 : vector<16x128xf32>
    %37 = arith.mulf %32, %36 : vector<16x128xf32>
    %cst_13 = arith.constant 1.411890e+01 : f32
    %38 = vector.broadcast %cst_13 : f32 to vector<16x128xf32>
    %39 = arith.mulf %38, %2 : vector<16x128xf32>
    %cst_14 = arith.constant 6.197700e+00 : f32
    %40 = vector.broadcast %cst_14 : f32 to vector<16x128xf32>
    %41 = arith.mulf %40, %0 : vector<16x128xf32>
    %42 = arith.addf %39, %41 : vector<16x128xf32>
    %cst_15 = arith.constant 3.366200e+00 : f32
    %43 = vector.broadcast %cst_15 : f32 to vector<16x128xf32>
    %44 = arith.mulf %43, %3 : vector<16x128xf32>
    %45 = arith.addf %42, %44 : vector<16x128xf32>
    %cst_16 = arith.constant 6.251700e-01 : f32
    %46 = vector.broadcast %cst_16 : f32 to vector<16x128xf32>
    %47 = arith.mulf %46, %4 : vector<16x128xf32>
    %48 = arith.addf %45, %47 : vector<16x128xf32>
    %cst_17 = arith.constant 3.109070e-02 : f32
    %49 = vector.broadcast %cst_17 : f32 to vector<16x128xf32>
    %50 = arith.mulf %49, %48 : vector<16x128xf32>
    %51 = tpu.reciprocal %50 {approx = true} : vector<16x128xf32> -> vector<16x128xf32>
    %52 = arith.mulf %50, %51 : vector<16x128xf32>
    %cst_18 = arith.constant 2.000000e+00 : f32
    %53 = vector.broadcast %cst_18 : f32 to vector<16x128xf32>
    %54 = arith.subf %53, %52 : vector<16x128xf32>
    %55 = arith.mulf %51, %54 : vector<16x128xf32>
    %56 = arith.mulf %50, %55 : vector<16x128xf32>
    %cst_19 = arith.constant 2.000000e+00 : f32
    %57 = vector.broadcast %cst_19 : f32 to vector<16x128xf32>
    %58 = arith.subf %57, %56 : vector<16x128xf32>
    %59 = arith.mulf %55, %58 : vector<16x128xf32>
    %cst_20 = arith.constant 2.054800e-01 : f32
    %60 = vector.broadcast %cst_20 : f32 to vector<16x128xf32>
    %61 = arith.mulf %60, %0 : vector<16x128xf32>
    %cst_21 = arith.constant 1.000000e+00 : f32
    %62 = vector.broadcast %cst_21 : f32 to vector<16x128xf32>
    %63 = arith.addf %62, %61 : vector<16x128xf32>
    %cst_22 = arith.constant -3.109070e-02 : f32
    %64 = vector.broadcast %cst_22 : f32 to vector<16x128xf32>
    %65 = arith.mulf %64, %63 : vector<16x128xf32>
    %cst_23 = arith.constant 1.000000e+00 : f32
    %66 = vector.broadcast %cst_23 : f32 to vector<16x128xf32>
    %67 = arith.addf %50, %66 : vector<16x128xf32>
    %68 = arith.mulf %67, %59 : vector<16x128xf32>
    %69 = math.log %68 : vector<16x128xf32>
    %70 = arith.mulf %65, %69 : vector<16x128xf32>
    %cst_24 = arith.constant 1.000000e+00 : f32
    %71 = vector.broadcast %cst_24 : f32 to vector<16x128xf32>
    %72 = arith.addf %71, %1 : vector<16x128xf32>
    %cst_25 = arith.constant 9.99999996E-13 : f32
    %73 = vector.broadcast %cst_25 : f32 to vector<16x128xf32>
    %74 = arith.maximumf %72, %73 : vector<16x128xf32>
    %75 = tpu.bitcast %74 : vector<16x128xf32> -> vector<16x128xi32>
    %76 = arith.sitofp %75 : vector<16x128xi32> to vector<16x128xf32>
    %cst_26 = arith.constant 0.333333343 : f32
    %77 = vector.broadcast %cst_26 : f32 to vector<16x128xf32>
    %78 = arith.mulf %76, %77 : vector<16x128xf32>
    %cst_27 = arith.constant 1.41996698E+9 : f32
    %79 = vector.broadcast %cst_27 : f32 to vector<16x128xf32>
    %80 = arith.subf %79, %78 : vector<16x128xf32>
    %81 = arith.fptosi %80 : vector<16x128xf32> to vector<16x128xi32>
    %82 = tpu.bitcast %81 : vector<16x128xi32> -> vector<16x128xf32>
    %83 = arith.mulf %74, %82 : vector<16x128xf32>
    %84 = arith.mulf %83, %82 : vector<16x128xf32>
    %85 = arith.mulf %84, %82 : vector<16x128xf32>
    %cst_28 = arith.constant 4.000000e+00 : f32
    %86 = vector.broadcast %cst_28 : f32 to vector<16x128xf32>
    %87 = arith.subf %86, %85 : vector<16x128xf32>
    %88 = arith.mulf %82, %87 : vector<16x128xf32>
    %cst_29 = arith.constant 0.333333343 : f32
    %89 = vector.broadcast %cst_29 : f32 to vector<16x128xf32>
    %90 = arith.mulf %88, %89 : vector<16x128xf32>
    %91 = arith.mulf %74, %90 : vector<16x128xf32>
    %92 = arith.mulf %91, %90 : vector<16x128xf32>
    %93 = arith.mulf %92, %90 : vector<16x128xf32>
    %cst_30 = arith.constant 4.000000e+00 : f32
    %94 = vector.broadcast %cst_30 : f32 to vector<16x128xf32>
    %95 = arith.subf %94, %93 : vector<16x128xf32>
    %96 = arith.mulf %90, %95 : vector<16x128xf32>
    %cst_31 = arith.constant 0.333333343 : f32
    %97 = vector.broadcast %cst_31 : f32 to vector<16x128xf32>
    %98 = arith.mulf %96, %97 : vector<16x128xf32>
    %99 = arith.mulf %74, %98 : vector<16x128xf32>
    %100 = arith.mulf %99, %98 : vector<16x128xf32>
    %101 = arith.mulf %100, %98 : vector<16x128xf32>
    %cst_32 = arith.constant 4.000000e+00 : f32
    %102 = vector.broadcast %cst_32 : f32 to vector<16x128xf32>
    %103 = arith.subf %102, %101 : vector<16x128xf32>
    %104 = arith.mulf %98, %103 : vector<16x128xf32>
    %cst_33 = arith.constant 0.333333343 : f32
    %105 = vector.broadcast %cst_33 : f32 to vector<16x128xf32>
    %106 = arith.mulf %104, %105 : vector<16x128xf32>
    %107 = arith.mulf %74, %106 : vector<16x128xf32>
    %108 = arith.mulf %107, %106 : vector<16x128xf32>
    %109 = arith.mulf %108, %106 : vector<16x128xf32>
    %cst_34 = arith.constant 4.000000e+00 : f32
    %110 = vector.broadcast %cst_34 : f32 to vector<16x128xf32>
    %111 = arith.subf %110, %109 : vector<16x128xf32>
    %112 = arith.mulf %106, %111 : vector<16x128xf32>
    %cst_35 = arith.constant 0.333333343 : f32
    %113 = vector.broadcast %cst_35 : f32 to vector<16x128xf32>
    %114 = arith.mulf %112, %113 : vector<16x128xf32>
    %115 = arith.mulf %74, %114 : vector<16x128xf32>
    %116 = arith.mulf %115, %115 : vector<16x128xf32>
    %cst_36 = arith.constant 1.000000e+00 : f32
    %117 = vector.broadcast %cst_36 : f32 to vector<16x128xf32>
    %118 = arith.subf %117, %1 : vector<16x128xf32>
    %cst_37 = arith.constant 9.99999996E-13 : f32
    %119 = vector.broadcast %cst_37 : f32 to vector<16x128xf32>
    %120 = arith.maximumf %118, %119 : vector<16x128xf32>
    %121 = tpu.bitcast %120 : vector<16x128xf32> -> vector<16x128xi32>
    %122 = arith.sitofp %121 : vector<16x128xi32> to vector<16x128xf32>
    %cst_38 = arith.constant 0.333333343 : f32
    %123 = vector.broadcast %cst_38 : f32 to vector<16x128xf32>
    %124 = arith.mulf %122, %123 : vector<16x128xf32>
    %cst_39 = arith.constant 1.41996698E+9 : f32
    %125 = vector.broadcast %cst_39 : f32 to vector<16x128xf32>
    %126 = arith.subf %125, %124 : vector<16x128xf32>
    %127 = arith.fptosi %126 : vector<16x128xf32> to vector<16x128xi32>
    %128 = tpu.bitcast %127 : vector<16x128xi32> -> vector<16x128xf32>
    %129 = arith.mulf %120, %128 : vector<16x128xf32>
    %130 = arith.mulf %129, %128 : vector<16x128xf32>
    %131 = arith.mulf %130, %128 : vector<16x128xf32>
    %cst_40 = arith.constant 4.000000e+00 : f32
    %132 = vector.broadcast %cst_40 : f32 to vector<16x128xf32>
    %133 = arith.subf %132, %131 : vector<16x128xf32>
    %134 = arith.mulf %128, %133 : vector<16x128xf32>
    %cst_41 = arith.constant 0.333333343 : f32
    %135 = vector.broadcast %cst_41 : f32 to vector<16x128xf32>
    %136 = arith.mulf %134, %135 : vector<16x128xf32>
    %137 = arith.mulf %120, %136 : vector<16x128xf32>
    %138 = arith.mulf %137, %136 : vector<16x128xf32>
    %139 = arith.mulf %138, %136 : vector<16x128xf32>
    %cst_42 = arith.constant 4.000000e+00 : f32
    %140 = vector.broadcast %cst_42 : f32 to vector<16x128xf32>
    %141 = arith.subf %140, %139 : vector<16x128xf32>
    %142 = arith.mulf %136, %141 : vector<16x128xf32>
    %cst_43 = arith.constant 0.333333343 : f32
    %143 = vector.broadcast %cst_43 : f32 to vector<16x128xf32>
    %144 = arith.mulf %142, %143 : vector<16x128xf32>
    %145 = arith.mulf %120, %144 : vector<16x128xf32>
    %146 = arith.mulf %145, %144 : vector<16x128xf32>
    %147 = arith.mulf %146, %144 : vector<16x128xf32>
    %cst_44 = arith.constant 4.000000e+00 : f32
    %148 = vector.broadcast %cst_44 : f32 to vector<16x128xf32>
    %149 = arith.subf %148, %147 : vector<16x128xf32>
    %150 = arith.mulf %144, %149 : vector<16x128xf32>
    %cst_45 = arith.constant 0.333333343 : f32
    %151 = vector.broadcast %cst_45 : f32 to vector<16x128xf32>
    %152 = arith.mulf %150, %151 : vector<16x128xf32>
    %153 = arith.mulf %120, %152 : vector<16x128xf32>
    %154 = arith.mulf %153, %152 : vector<16x128xf32>
    %155 = arith.mulf %154, %152 : vector<16x128xf32>
    %cst_46 = arith.constant 4.000000e+00 : f32
    %156 = vector.broadcast %cst_46 : f32 to vector<16x128xf32>
    %157 = arith.subf %156, %155 : vector<16x128xf32>
    %158 = arith.mulf %152, %157 : vector<16x128xf32>
    %cst_47 = arith.constant 0.333333343 : f32
    %159 = vector.broadcast %cst_47 : f32 to vector<16x128xf32>
    %160 = arith.mulf %158, %159 : vector<16x128xf32>
    %161 = arith.mulf %120, %160 : vector<16x128xf32>
    %162 = arith.mulf %161, %161 : vector<16x128xf32>
    %163 = arith.addf %116, %162 : vector<16x128xf32>
    %cst_48 = arith.constant 2.000000e+00 : f32
    %164 = vector.broadcast %cst_48 : f32 to vector<16x128xf32>
    %165 = arith.subf %163, %164 : vector<16x128xf32>
    %cst_49 = arith.constant 1.92366099 : f32
    %166 = vector.broadcast %cst_49 : f32 to vector<16x128xf32>
    %167 = arith.mulf %165, %166 : vector<16x128xf32>
    %168 = arith.subf %70, %37 : vector<16x128xf32>
    %169 = arith.mulf %167, %168 : vector<16x128xf32>
    %170 = arith.addf %37, %169 : vector<16x128xf32>
    %c0_50 = arith.constant 0 : index
    %c0_51 = arith.constant 0 : index
    %171 = vector.load %arg3[%c0_50, %c0_51] : memref<16x128xf32, #tpu.memory_space<vmem>>, vector<16x128xf32>
    tpu.vector_store %arg3[%c0_50, %c0_51], %170 {strides = array<i32>} : memref<16x128xf32, #tpu.memory_space<vmem>>, vector<16x128xf32>,
    return
  }
  func.func @transform_0(%arg0: i32) -> (i32, i32) {
    %c0_i32 = arith.constant 0 : i32
    %c0_i32_0 = arith.constant 0 : i32
    return %arg0, %c0_i32 : i32, i32
  }
  func.func @transform_1(%arg0: i32) -> (i32, i32) {
    %c0_i32 = arith.constant 0 : i32
    %c0_i32_0 = arith.constant 0 : i32
    return %arg0, %c0_i32 : i32, i32
  }
  func.func @transform_2(%arg0: i32) -> (i32, i32) {
    %c0_i32 = arith.constant 0 : i32
    %c0_i32_0 = arith.constant 0 : i32
    return %arg0, %c0_i32 : i32, i32
  }
}

</mosaic_0001>

<bundles_post_ra>
// kernel: tpu_custom_call.1
= control target key start
LH: loop header
LB: loop body
LE: loop exit
PB: predicated region body
PF: predicated region fallthrough
CT: control target
= control target key end

     0   :  { %7 = vsyncpa [#allocation3], 0  ;;  %s598_s0 = inlined_call_operand.hbm [shape: f32[16,128], index: 0, kind: input, shape index: {}]   ;;  %s599_s1 = inlined_call_operand.hbm [shape: f32[16,128], index: 1, kind: input, shape index: {}]   ;;  %s600_s2 = inlined_call_operand.hbm [shape: f32[16,128], index: 2, kind: output, shape index: {}]  }
   0x1   :  { %8 = vsyncpa [#allocation6], 0 }
   0x2   :  { %9 = vsyncpa [#allocation4], 0  ;;  %s14_s11 = sshll.u32 %s598_s0, 4  ;;  %s463_s12 = smov [#allocation2]   ;;  %s15_s11 = int_to_ptr.hbm [resolvable:$true] %s14_s11 }
   0x3   :  { %s16_s13 = sshll.u32 %s463_s12, 4  ;;  %s27_s16 = sshll.u32 %s599_s1, 4  ;;  %s17_s13 = int_to_ptr.vmem [resolvable:$true] %s16_s13  ;;  %s28_s16 = int_to_ptr.hbm [resolvable:$true] %s27_s16 }
   0x4   :  { %s464_s17 = smov 128   ;;  %s465_s18 = smov 8  }
   0x5   :  { %22 = dma.hbm_to_vmem [thread:$0]  %s15_s11, 256, %s17_s13, [#allocation3], %s464_s17, %s464_s17, %s465_s18  }
   0x6   :  { %s466_s19 = smov [#allocation5]  }
   0x7   :  { %s29_s20 = sshll.u32 %s466_s19, 4  ;;  %s30_s20 = int_to_ptr.vmem [resolvable:$true] %s29_s20 }
   0x8   :  { %35 = dma.hbm_to_vmem [thread:$0]  %s28_s16, 256, %s30_s20, [#allocation6], %s464_s17, %s464_s17, %s465_s18  }
   0x9   :  { %457 = dma.done.wait [#allocation3], 256  }
   0xa   :  { %458 = vsyncadd [#allocation3], 4294967040 }
   0xb   :  { %459 = dma.done.wait [#allocation6], 256  }
   0xc   :  { %460 = vsyncadd [#allocation6], 4294967040  ;;  %v495_v0 = vld [vmem:[#allocation2] sm:$0xff]  ;;  %v497_v1 = vld [vmem:[#allocation2 + $0x8] sm:$0xff]  ;;  %s467_s0 = smov [#allocation7]   ;;  %s324_s23 = sshll.u32 %s600_s2, 4  ;;  %s325_s23 = int_to_ptr.hbm [resolvable:$true] %s324_s23 }
   0xd   :  { %v46_v2 = vld [vmem:[#allocation5] sm:$0xff]  ;;  %v47_v3 = vld [vmem:[#allocation5 + $0x8] sm:$0xff]  ;;  %365 = vrsqrt.f32 %v495_v0  ;;  %vm55_vm0 = vcmp.eq.f32.partialorder %v495_v0, inf  ;;  %v58_v15 = vand.u32 2147483648, %v495_v0  ;;  %vm57_vm1 = vcmp.eq.f32.partialorder %v495_v0, 0.0  ;;  %s322_s1 = sshll.u32 %s467_s0, 4  ;;  %s323_s1 = int_to_ptr.vmem [resolvable:$true] %s322_s1 }
   0xe   :  { %367 = vrsqrt.f32 %v497_v1  ;;  %v168_v4 = vadd.f32 1.0, %v46_v2  ;;  %v169_v5 = vadd.f32 1.0, %v47_v3  ;;  %v236_v9 = vsub.f32 1.0, %v46_v2 }
   0xf   :  { %v237_v10 = vsub.f32 1.0, %v47_v3  ;;  %vm67_vm2 = vcmp.eq.f32.partialorder %v497_v1, inf  ;;  %v70_v19 = vand.u32 2147483648, %v497_v1  ;;  %vm69_vm3 = vcmp.eq.f32.partialorder %v497_v1, 0.0 }
  0x10   :  { %v501_v6 = vmax.f32 %v168_v4, 1e-12  ;;  %v503_v7 = vmax.f32 %v169_v5, 1e-12  ;;  %v511_v17 = vmax.f32 %v236_v9, 1e-12  ;;  %v74_v27 = vmul.f32 %v495_v0, %v495_v0 }
  0x11   :  { %v78_v23 = vmul.f32 3.5876, %v495_v0  ;;  %v518_v24 = vmax.f32 %v237_v10, 1e-12  ;;  %v75_v31 = vmul.f32 %v497_v1, %v497_v1  ;;  %v79_v32 = vmul.f32 3.5876, %v497_v1 }
  0x12   :  { %v174_v13 = vcvt.s32.f32 %v501_v6  ;;  %v175_v14 = vcvt.s32.f32 %v503_v7  ;;  %v242_v25 = vcvt.s32.f32 %v511_v17  ;;  %v124_v45 = vmul.f32 6.1977, %v495_v0 }
  0x13   :  { %v366_v8 = vpop.eup %365  ;;  %v243_v42 = vcvt.s32.f32 %v518_v24  ;;  %v86_v49 = vmul.f32 0.49294, %v74_v27  ;;  %v125_v50 = vmul.f32 6.1977, %v497_v1  ;;  %v87_v53 = vmul.f32 0.49294, %v75_v31 }
  0x14   :  { %v368_v11 = vpop.eup %367  ;;  %v49_v12 = vmul.f32 %v366_v8, %v495_v0  ;;  %v176_v20 = vmul.f32 0.33333334, %v174_v13  ;;  %v177_v21 = vmul.f32 0.33333334, %v175_v14  ;;  %v244_v33 = vmul.f32 0.33333334, %v242_v25 }
  0x15   :  { %v61_v16 = vmul.f32 %v368_v11, %v497_v1  ;;  %v132_v54 = vmul.f32 0.62517, %v74_v27  ;;  %v133_v57 = vmul.f32 0.62517, %v75_v31  ;;  %v245_v58 = vmul.f32 0.33333334, %v243_v42 }
  0x16   :  { %v50_v18 = vmul.f32 %v366_v8, %v49_v12  ;;  %v178_v28 = vsub.f32 1.419967e+09, %v176_v20  ;;  %v179_v29 = vsub.f32 1.419967e+09, %v177_v21  ;;  %v246_v43 = vsub.f32 1.419967e+09, %v244_v33 }
  0x17   :  { %v62_v22 = vmul.f32 %v368_v11, %v61_v16 }
  0x18   :  { %v51_v26 = vmul.f32 0.5, %v50_v18  ;;  %vm340_vm4 = vcmp.lt.s32.totalorder %v178_v28, 0  ;;  %v341_v35 = vceil.f32 %v178_v28  ;;  %v342_v36 = vfloor.f32 %v178_v28 }
  0x19   :  { %v63_v30 = vmul.f32 0.5, %v62_v22  ;;  %vm345_vm5 = vcmp.lt.s32.totalorder %v179_v29, 0  ;;  %v346_v38 = vceil.f32 %v179_v29  ;;  %v347_v39 = vfloor.f32 %v179_v29 }
  0x1a   :  { %v52_v34 = vsub.f32 1.5, %v51_v26  ;;  %v343_v41 = vsel %vm340_vm4, %v341_v35, %v342_v36  ;;  %vm350_vm6 = vcmp.lt.s32.totalorder %v246_v43, 0  ;;  %v351_v62 = vceil.f32 %v246_v43 }
  0x1b   :  { %v64_v37 = vsub.f32 1.5, %v63_v30  ;;  %v344_v46 = vcvt.f32.s32 %v343_v41  ;;  %v348_v47 = vsel %vm345_vm5, %v346_v38, %v347_v39  ;;  %v352_v10 = vfloor.f32 %v246_v43 }
  0x1c   :  { %v53_v40 = vmul.f32 %v366_v8, %v52_v34  ;;  %v349_v51 = vcvt.f32.s32 %v348_v47  ;;  %v247_v28 = vsub.f32 1.419967e+09, %v245_v58 }
  0x1d   :  { %v65_v44 = vmul.f32 %v368_v11, %v64_v37  ;;  %v184_v55 = vmul.f32 %v344_v46, %v501_v6  ;;  %v353_v35 = vsel %vm350_vm6, %v351_v62, %v352_v10 }
  0x1e   :  { %v54_v48 = vmul.f32 %v53_v40, %v495_v0  ;;  %v185_v61 = vmul.f32 %v349_v51, %v503_v7  ;;  %v356_v39 = vceil.f32 %v247_v28  ;;  %v357_v40 = vfloor.f32 %v247_v28 }
  0x1f   :  { %v66_v52 = vmul.f32 %v65_v44, %v497_v1  ;;  %v186_v4 = vmul.f32 %v344_v46, %v184_v55  ;;  %v354_v42 = vcvt.f32.s32 %v353_v35  ;;  %vm355_vm7 = vcmp.lt.s32.totalorder %v247_v28, 0 }
  0x20   :  { %v56_v56 = vsel %vm55_vm0, %v495_v0, %v54_v48  ;;  %v358_v48 = vsel %vm355_vm7, %v356_v39, %v357_v40 }
  0x21   :  { %v59_v59 = vsel %vm57_vm1, %v58_v15, %v56_v56  ;;  %v68_v60 = vsel %vm67_vm2, %v497_v1, %v66_v52  ;;  %v188_v25 = vmul.f32 %v344_v46, %v186_v4 }
  0x22   :  { %v71_v63 = vsel %vm69_vm3, %v70_v19, %v68_v60  ;;  %v72_v2 = vmul.f32 %v59_v59, %v495_v0  ;;  %v76_v3 = vmul.f32 7.5957, %v59_v59  ;;  %v122_v9 = vmul.f32 14.1189, %v59_v59 }
  0x23   :  { %v73_v5 = vmul.f32 %v71_v63, %v497_v1  ;;  %v77_v8 = vmul.f32 7.5957, %v71_v63  ;;  %v123_v13 = vmul.f32 14.1189, %v71_v63  ;;  %v187_v19 = vmul.f32 %v349_v51, %v185_v61 }
  0x24   :  { %v80_v11 = vadd.f32 %v78_v23, %v76_v3  ;;  %v82_v12 = vmul.f32 1.6382, %v72_v2  ;;  %v128_v14 = vmul.f32 3.3662, %v72_v2  ;;  %v126_v18 = vadd.f32 %v124_v45, %v122_v9 }
  0x25   :  { %v81_v15 = vadd.f32 %v79_v32, %v77_v8  ;;  %v83_v16 = vmul.f32 1.6382, %v73_v5  ;;  %v129_v20 = vmul.f32 3.3662, %v73_v5  ;;  %v127_v22 = vadd.f32 %v125_v50, %v123_v13 }
  0x26   :  { %v84_v21 = vadd.f32 %v82_v12, %v80_v11  ;;  %v130_v27 = vadd.f32 %v128_v14, %v126_v18  ;;  %v189_v31 = vmul.f32 %v349_v51, %v187_v19  ;;  %v190_v33 = vsub.f32 4.0, %v188_v25 }
  0x27   :  { %v85_v26 = vadd.f32 %v83_v16, %v81_v15  ;;  %v131_v30 = vadd.f32 %v129_v20, %v127_v22  ;;  %v359_v50 = vcvt.f32.s32 %v358_v48 }
  0x28   :  { %v88_v29 = vadd.f32 %v86_v49, %v84_v21  ;;  %v134_v23 = vadd.f32 %v132_v54, %v130_v27  ;;  %v191_v32 = vsub.f32 4.0, %v189_v31  ;;  %v192_v38 = vmul.f32 %v344_v46, %v190_v33 }
  0x29   :  { %v89_v34 = vadd.f32 %v87_v53, %v85_v26  ;;  %v135_v36 = vadd.f32 %v133_v57, %v131_v30  ;;  %v252_v46 = vmul.f32 %v354_v42, %v511_v17 }
  0x2a   :  { %v546_v37 = vmul.f32 0.0621814, %v88_v29  ;;  %v550_v44 = vmul.f32 0.0310907, %v134_v23  ;;  %v193_v47 = vmul.f32 %v349_v51, %v191_v32  ;;  %v194_v43 = vmul.f32 0.33333334, %v192_v38 }
  0x2b   :  { %v548_v41 = vmul.f32 0.0621814, %v89_v34  ;;  %v552_v45 = vmul.f32 0.0310907, %v135_v36  ;;  %v253_v51 = vmul.f32 %v359_v50, %v518_v24  ;;  %v254_v54 = vmul.f32 %v354_v42, %v252_v46 }
  0x2c   :  { %369 = vrcp.f32 %v546_v37  ;;  %v195_v49 = vmul.f32 0.33333334, %v193_v47  ;;  %v196_v52 = vmul.f32 %v194_v43, %v501_v6 }
  0x2d   :  { %371 = vrcp.f32 %v548_v41  ;;  %v255_v57 = vmul.f32 %v359_v50, %v253_v51  ;;  %v256_v58 = vmul.f32 %v354_v42, %v254_v54 }
  0x2e   :  { %373 = vrcp.f32 %v550_v44  ;;  %v197_v53 = vmul.f32 %v195_v49, %v503_v7  ;;  %v198_v55 = vmul.f32 %v196_v52, %v194_v43 }
  0x2f   :  { %375 = vrcp.f32 %v552_v45  ;;  %v257_v63 = vmul.f32 %v359_v50, %v255_v57  ;;  %v258_v4 = vsub.f32 4.0, %v256_v58 }
  0x30   :  { %v199_v56 = vmul.f32 %v197_v53, %v195_v49  ;;  %v200_v60 = vmul.f32 %v198_v55, %v194_v43 }
  0x31   :  { %v259_v10 = vsub.f32 4.0, %v257_v63  ;;  %v260_v13 = vmul.f32 %v354_v42, %v258_v4 }
  0x32   :  { %v370_v59 = vpop.eup %369  ;;  %v201_v62 = vmul.f32 %v199_v56, %v195_v49  ;;  %v202_v3 = vsub.f32 4.0, %v200_v60 }
  0x33   :  { %v372_v61 = vpop.eup %371  ;;  %v94_v8 = vmul.f32 %v370_v59, %v546_v37  ;;  %v261_v16 = vmul.f32 %v359_v50, %v259_v10  ;;  %v262_v21 = vmul.f32 0.33333334, %v260_v13 }
  0x34   :  { %v374_v2 = vpop.eup %373  ;;  %v203_v9 = vsub.f32 4.0, %v201_v62  ;;  %v95_v11 = vmul.f32 %v372_v61, %v548_v41  ;;  %v204_v12 = vmul.f32 %v202_v3, %v194_v43 }
  0x35   :  { %v376_v5 = vpop.eup %375  ;;  %v140_v14 = vmul.f32 %v374_v2, %v550_v44  ;;  %v96_v22 = vsub.f32 2.0, %v94_v8  ;;  %v263_v25 = vmul.f32 0.33333334, %v261_v16  ;;  %v264_v28 = vmul.f32 %v262_v21, %v511_v17 }
  0x36   :  { %v205_v15 = vmul.f32 %v203_v9, %v195_v49  ;;  %v141_v18 = vmul.f32 %v376_v5, %v552_v45  ;;  %v206_v20 = vmul.f32 0.33333334, %v204_v12  ;;  %v97_v26 = vsub.f32 2.0, %v95_v11 }
  0x37   :  { %v142_v29 = vsub.f32 2.0, %v140_v14  ;;  %v265_v31 = vmul.f32 %v263_v25, %v518_v24  ;;  %v266_v23 = vmul.f32 %v264_v28, %v262_v21  ;;  %v98_v35 = vmul.f32 %v370_v59, %v96_v22 }
  0x38   :  { %v207_v19 = vmul.f32 0.33333334, %v205_v15  ;;  %v208_v27 = vmul.f32 %v206_v20, %v501_v6  ;;  %v143_v33 = vsub.f32 2.0, %v141_v18  ;;  %v99_v38 = vmul.f32 %v372_v61, %v97_v26 }
  0x39   :  { %v267_v32 = vmul.f32 %v265_v31, %v263_v25  ;;  %v268_v40 = vmul.f32 %v266_v23, %v262_v21  ;;  %v144_v42 = vmul.f32 %v374_v2, %v142_v29  ;;  %v100_v46 = vmul.f32 %v98_v35, %v546_v37 }
  0x3a   :  { %v209_v30 = vmul.f32 %v207_v19, %v503_v7  ;;  %v210_v34 = vmul.f32 %v208_v27, %v206_v20  ;;  %v145_v48 = vmul.f32 %v376_v5, %v143_v33  ;;  %v101_v51 = vmul.f32 %v99_v38, %v548_v41 }
  0x3b   :  { %v269_v43 = vmul.f32 %v267_v32, %v263_v25  ;;  %v270_v50 = vsub.f32 4.0, %v268_v40  ;;  %v146_v56 = vmul.f32 %v144_v42, %v550_v44  ;;  %v102_v62 = vsub.f32 2.0, %v100_v46 }
  0x3c   :  { %v211_v36 = vmul.f32 %v209_v30, %v207_v19  ;;  %v212_v39 = vmul.f32 %v210_v34, %v206_v20  ;;  %v147_v59 = vmul.f32 %v145_v48, %v552_v45  ;;  %v103_v3 = vsub.f32 2.0, %v101_v51 }
  0x3d   :  { %v271_v53 = vsub.f32 4.0, %v269_v43  ;;  %v272_v55 = vmul.f32 %v270_v50, %v262_v21  ;;  %v148_v8 = vsub.f32 2.0, %v146_v56  ;;  %v104_v14 = vmul.f32 %v102_v62, %v98_v35 }
  0x3e   :  { %v213_v47 = vmul.f32 %v211_v36, %v207_v19  ;;  %v214_v49 = vsub.f32 4.0, %v212_v39  ;;  %v149_v11 = vsub.f32 2.0, %v147_v59  ;;  %v112_v15 = vadd.f32 1.0, %v546_v37 }
  0x3f   :  { %v273_v58 = vmul.f32 %v271_v53, %v263_v25  ;;  %v274_v61 = vmul.f32 0.33333334, %v272_v55  ;;  %v113_v21 = vadd.f32 1.0, %v548_v41  ;;  %v150_v25 = vmul.f32 %v148_v8, %v144_v42 }
  0x40   :  { %v215_v52 = vsub.f32 4.0, %v213_v47  ;;  %v216_v54 = vmul.f32 %v214_v49, %v206_v20  ;;  %v105_v20 = vmul.f32 %v103_v3, %v99_v38  ;;  %v158_v26 = vadd.f32 1.0, %v550_v44 }
  0x41   :  { %v275_v2 = vmul.f32 0.33333334, %v273_v58  ;;  %v276_v5 = vmul.f32 %v274_v61, %v511_v17  ;;  %v151_v29 = vmul.f32 %v149_v11, %v145_v48  ;;  %v159_v30 = vadd.f32 1.0, %v552_v45 }
  0x42   :  { %v217_v57 = vmul.f32 %v215_v52, %v207_v19  ;;  %v218_v60 = vmul.f32 0.33333334, %v216_v54  ;;  %v114_v33 = vmul.f32 %v112_v15, %v104_v14  ;;  %v115_v23 = vmul.f32 %v113_v21, %v105_v20 }
  0x43   :  { %v277_v10 = vmul.f32 %v275_v2, %v518_v24  ;;  %v278_v13 = vmul.f32 %v276_v5, %v274_v61  ;;  %v160_v36 = vmul.f32 %v158_v26, %v150_v25  ;;  %v161_v41 = vmul.f32 %v159_v30, %v151_v29 }
  0x44   :  { %v219_v63 = vmul.f32 0.33333334, %v217_v57  ;;  %v220_v4 = vmul.f32 %v218_v60, %v501_v6  ;;  %v106_v40 = vmul.f32 0.2137, %v495_v0  ;;  %v107_v44 = vmul.f32 0.2137, %v497_v1 }
  0x45   :  { %v279_v18 = vmul.f32 %v277_v10, %v275_v2  ;;  %v280_v19 = vmul.f32 %v278_v13, %v274_v61  ;;  %377 = vlog2.f32 %v114_v33  ;;  %v152_v45 = vmul.f32 0.20548, %v495_v0 }
  0x46   :  { %v221_v9 = vmul.f32 %v219_v63, %v503_v7  ;;  %v222_v12 = vmul.f32 %v220_v4, %v218_v60  ;;  %379 = vlog2.f32 %v115_v23  ;;  %v153_v48 = vmul.f32 0.20548, %v497_v1 }
  0x47   :  { %v281_v28 = vmul.f32 %v279_v18, %v275_v2  ;;  %v282_v31 = vsub.f32 4.0, %v280_v19  ;;  %381 = vlog2.f32 %v160_v36  ;;  %v108_v53 = vadd.f32 1.0, %v106_v40 }
  0x48   :  { %v223_v16 = vmul.f32 %v221_v9, %v219_v63  ;;  %v224_v22 = vmul.f32 %v222_v12, %v218_v60  ;;  %383 = vlog2.f32 %v161_v41  ;;  %v109_v51 = vadd.f32 1.0, %v107_v44 }
  0x49   :  { %v283_v34 = vsub.f32 4.0, %v281_v28  ;;  %v284_v35 = vmul.f32 %v282_v31, %v274_v61  ;;  %v154_v57 = vadd.f32 1.0, %v152_v45  ;;  %v155_v58 = vadd.f32 1.0, %v153_v48 }
  0x4a   :  { %v225_v27 = vmul.f32 %v223_v16, %v219_v63  ;;  %v226_v37 = vsub.f32 4.0, %v224_v22  ;;  %v111_v3 = vmul.f32 -0.0621814, %v109_v51 }
  0x4b   :  { %v285_v38 = vmul.f32 %v283_v34, %v275_v2  ;;  %v286_v39 = vmul.f32 0.33333334, %v284_v35  ;;  %v378_v56 = vpop.eup %377  ;;  %v156_v8 = vmul.f32 -0.0310907, %v154_v57  ;;  %v157_v9 = vmul.f32 -0.0310907, %v155_v58 }
  0x4c   :  { %v227_v32 = vsub.f32 4.0, %v225_v27  ;;  %v228_v47 = vmul.f32 %v226_v37, %v218_v60  ;;  %v380_v60 = vpop.eup %379  ;;  %v117_v12 = vmul.f32 0.6931472, %v378_v56 }
  0x4d   :  { %v287_v42 = vmul.f32 0.33333334, %v285_v38  ;;  %v288_v43 = vmul.f32 %v286_v39, %v511_v17  ;;  %v382_v62 = vpop.eup %381  ;;  %v119_v15 = vmul.f32 0.6931472, %v380_v60 }
  0x4e   :  { %v229_v49 = vmul.f32 %v227_v32, %v219_v63  ;;  %v230_v54 = vmul.f32 0.33333334, %v228_v47  ;;  %v384_v2 = vpop.eup %383  ;;  %v110_v63 = vmul.f32 -0.0621814, %v108_v53  ;;  %v163_v13 = vmul.f32 0.6931472, %v382_v62 }
  0x4f   :  { %v289_v50 = vmul.f32 %v287_v42, %v518_v24  ;;  %v290_v46 = vmul.f32 %v288_v43, %v286_v39  ;;  %v165_v16 = vmul.f32 0.6931472, %v384_v2  ;;  %v121_v27 = vmul.f32 %v119_v15, %v111_v3 }
  0x50   :  { %v231_v0 = vmul.f32 0.33333334, %v229_v49  ;;  %v232_v4 = vmul.f32 %v230_v54, %v501_v6  ;;  %v120_v25 = vmul.f32 %v117_v12, %v110_v63  ;;  %v166_v6 = vmul.f32 %v163_v13, %v156_v8 }
  0x51   :  { %v291_v52 = vmul.f32 %v289_v50, %v287_v42  ;;  %v292_v55 = vmul.f32 %v290_v46, %v286_v39  ;;  %v167_v28 = vmul.f32 %v165_v16, %v157_v9 }
  0x52   :  { %v233_v10 = vmul.f32 %v231_v0, %v503_v7  ;;  %v234_v20 = vmul.f32 %v232_v4, %v232_v4  ;;  %v310_v33 = vsub.f32 %v166_v6, %v120_v25 }
  0x53   :  { %v293_v59 = vmul.f32 %v291_v52, %v287_v42  ;;  %v294_v61 = vsub.f32 4.0, %v292_v55  ;;  %v311_v23 = vsub.f32 %v167_v28, %v121_v27 }
  0x54   :  { %v235_v22 = vmul.f32 %v233_v10, %v233_v10 }
  0x55   :  { %v295_v1 = vsub.f32 4.0, %v293_v59  ;;  %v296_v5 = vmul.f32 %v294_v61, %v286_v39 }
  0x57   :  { %v297_v11 = vmul.f32 %v295_v1, %v287_v42  ;;  %v298_v14 = vmul.f32 0.33333334, %v296_v5 }
  0x59   :  { %v299_v18 = vmul.f32 0.33333334, %v297_v11  ;;  %v300_v21 = vmul.f32 %v298_v14, %v511_v17 }
  0x5b   :  { %v301_v19 = vmul.f32 %v299_v18, %v518_v24  ;;  %v302_v26 = vmul.f32 %v300_v21, %v300_v21 }
  0x5d   :  { %v303_v29 = vmul.f32 %v301_v19, %v301_v19  ;;  %v304_v7 = vadd.f32 %v302_v26, %v234_v20 }
  0x5f   :  { %v305_v30 = vadd.f32 %v303_v29, %v235_v22  ;;  %v338_v31 = vadd.f32 -2.0, %v304_v7 }
  0x61   :  { %v339_v34 = vadd.f32 -2.0, %v305_v30  ;;  %v308_v37 = vmul.f32 1.923661, %v338_v31 }
  0x63   :  { %v309_v35 = vmul.f32 1.923661, %v339_v34  ;;  %v312_v36 = vmul.f32 %v310_v33, %v308_v37 }
  0x65   :  { %v313_v17 = vmul.f32 %v311_v23, %v309_v35  ;;  %v314_v24 = vadd.f32 %v312_v36, %v120_v25 }
  0x67   :  { %v315_v32 = vadd.f32 %v313_v17, %v121_v27  ;;  %316 = vst [vmem:[#allocation7] sm:$0xff] %v314_v24 }
  0x69   :  { %317 = vst [vmem:[#allocation7 + $0x8] sm:$0xff] %v315_v32 }
  0x6a   :  { %330 = dma.vmem_to_hbm [thread:$0]  %s323_s1, 256, %s325_s23, [#allocation4], %s464_s17, %s464_s17, %s465_s18  }
  0x6b   :  { %461 = dma.done.wait [#allocation4], 256  }
  0x6c   :  { %462 = vsyncadd [#allocation4], 4294967040 }
  0x6d   :  { %335 = vsyncpa [#allocation3], 1 }
  0x6e   :  { %336 = vsyncpa [#allocation6], 1 }
  0x6f   :  { %337 = vsyncpa [#allocation4], 1 }

</bundles_post_ra>
